<compile_context>
chip_gen: v7x
topology: tpu7x:2x2x1
jax: 0.10.0
libtpu: 0.0.40
codegen_flags: <defaults>
</compile_context>

<pallas_src>
import functools

import jax
import jax.numpy as jnp
from jax.experimental import pallas as pl
from jax.experimental.pallas import tpu as pltpu

_LANES = 128


def _vmem_limit_bytes():
    # Cap well below physical VMEM so Mosaic keeps headroom for internal
    # scratch / double buffers: 64 MiB on v5e/v6e (128 MiB physical),
    # ~48 MiB on v7x (64 MiB physical).
    try:
        cap = pltpu.get_tpu_info().vmem_capacity_bytes
        return int(min(64 * 1024 * 1024, cap * 3 // 4))
    except Exception:  # query unavailable -> conservative default
        return 48 * 1024 * 1024


_VMEM_LIMIT = _vmem_limit_bytes()


def _rup(n, m=_LANES):
    return ((n + m - 1) // m) * m


def _pad_axis(a, axis, target):
    if a.shape[axis] == target:
        return a
    pad = [(0, 0)] * a.ndim
    pad[axis] = (0, target - a.shape[axis])
    return jnp.pad(a, pad)


def _pick_row_tile(m, target=512):
    """Largest multiple-of-8 tile <= target dividing the padded row count,
    halved (not below 256) when that would leave <2 grid steps (v7x megacore)."""
    mp = _rup(m, 8)

    def divisor(limit):
        t = min(limit, mp)
        t -= t % 8
        t = max(t, 8)
        while mp % t:
            t -= 8
        return t

    tile = divisor(target)
    if mp // tile < 2 and mp >= 2 * 256:
        tile = divisor(max(256, tile // 2))
    return tile, mp


def _fold_bn(gamma, beta, mean, var, eps, c_pad):
    scale = gamma / jnp.sqrt(var + eps)
    bias = beta - mean * scale
    # padded lanes get scale=0, bias=0 so they stay exactly zero downstream
    scale = _pad_axis(scale.astype(jnp.float32), 0, c_pad).reshape(1, c_pad)
    bias = _pad_axis(bias.astype(jnp.float32), 0, c_pad).reshape(1, c_pad)
    return scale, bias


# --------------------------------------------------------------------------
# 1) pointwise conv (1x1) + BN (+ SiLU):  y = act((x @ W) * s + b)
# --------------------------------------------------------------------------
def _pointwise_kernel(x_ref, w_ref, scale_ref, bias_ref, o_ref, *, act):
    # bf16 operands on the MXU, f32 accumulation + f32 elementwise (v5e VPU).
    y = jnp.dot(x_ref[...], w_ref[...], preferred_element_type=jnp.float32)
    y = y * scale_ref[...] + bias_ref[...]
    if act:
        y = y * jax.nn.sigmoid(y)          # SiLU
    o_ref[...] = y.astype(o_ref.dtype)


def _pointwise_conv_bn(x2d, w, scale, bias, *, act, m_tile, out_dtype):
    M, Cin = x2d.shape
    Cout = w.shape[1]
    grid = (M // m_tile,)
    out_isize = jnp.dtype(out_dtype).itemsize
    return pl.pallas_call(
        functools.partial(_pointwise_kernel, act=act),
        out_shape=jax.ShapeDtypeStruct((M, Cout), out_dtype),
        grid_spec=pltpu.PrefetchScalarGridSpec(
            num_scalar_prefetch=0,
            grid=grid,
            in_specs=[
                pl.BlockSpec((m_tile, Cin), lambda i: (i, 0)),
                pl.BlockSpec((Cin, Cout), lambda i: (0, 0)),
                pl.BlockSpec((1, Cout), lambda i: (0, 0)),
                pl.BlockSpec((1, Cout), lambda i: (0, 0)),
            ],
            out_specs=pl.BlockSpec((m_tile, Cout), lambda i: (i, 0)),
        ),
        compiler_params=pltpu.CompilerParams(
            dimension_semantics=("parallel",),
            vmem_limit_bytes=_VMEM_LIMIT),
        cost_estimate=pl.CostEstimate(
            flops=2 * M * Cin * Cout,
            transcendentals=(M * Cout) if act else 0,
            bytes_accessed=(x2d.size * x2d.dtype.itemsize
                            + w.size * w.dtype.itemsize
                            + M * Cout * out_isize + 8 * Cout)),
    )(x2d, w, scale, bias)


# --------------------------------------------------------------------------
# 2) depthwise KxK conv + BN + SiLU, fused with SE global average pool.
#    Zero halo is built in VMEM; output is written already flattened as
#    (B, HW_padded, C) so the projection kernel reads it directly.
# --------------------------------------------------------------------------
def _dwconv_bn_silu_pool_kernel(x_ref, w_ref, scale_ref, bias_ref,
                                o_ref, pool_ref, xpad_ref, *,
                                ksize, stride, pad, h_in, w_in,
                                h_out, w_out, hw_total, row_chunk):
    c = x_ref.shape[-1]

    # Build the zero halo in VMEM (no extra HBM read+write of the activation).
    xpad_ref[...] = jnp.zeros_like(xpad_ref)
    xpad_ref[pad:pad + h_in, pad:pad + w_in, :] = (
        x_ref[0].astype(xpad_ref.dtype))

    w_taps = w_ref[...].astype(jnp.float32)          # (K*K, c), resident
    scale = scale_ref[0]                             # (c,)
    bias = bias_ref[0]                               # (c,)

    pool_acc = jnp.zeros((1, c), jnp.float32)
    for r0 in range(0, h_out, row_chunk):            # static chunk loop
        rc = min(row_chunk, h_out - r0)
        # Input-row band needed by this chunk, loaded once; taps slice from it.
        band_lo = r0 * stride
        band_hi = (r0 + rc - 1) * stride + ksize
        band = xpad_ref[band_lo:band_hi, :, :]       # (band_h, Wp, c) f32
        acc = jnp.zeros((rc, w_out, c), jnp.float32)
        for kh in range(ksize):
            for kw in range(ksize):
                patch = jax.lax.slice(
                    band, (kh, kw, 0),
                    (kh + (rc - 1) * stride + 1,
                     kw + (w_out - 1) * stride + 1,
                     c),
                    (stride, stride, 1))             # (rc, w_out, c)
                acc = acc + patch * w_taps[kh * ksize + kw]
        y = acc * scale + bias                       # fused BatchNorm (eval)
        y = y * jax.nn.sigmoid(y)                    # SiLU, f32 on VPU/EUP
        y2 = y.reshape(rc * w_out, c)
        o_ref[0, r0 * w_out:(r0 + rc) * w_out, :] = y2.astype(o_ref.dtype)
        # SE "squeeze": accumulate the global average pool in the same pass.
        pool_acc = pool_acc + jnp.sum(y2, axis=0, keepdims=True)

    hw_valid = h_out * w_out
    if hw_total > hw_valid:                          # zero the row-padding tail
        o_ref[0, hw_valid:hw_total, :] = jnp.zeros(
            (hw_total - hw_valid, c), o_ref.dtype)
    pool_ref[0] = (pool_acc * (1.0 / hw_valid)).astype(pool_ref.dtype)


def _depthwise_conv_bn_silu_pool(h, w_taps, scale, bias, *,
                                 kernel_size, stride, h_out, w_out, hw_total):
    B, H, W, Cp = h.shape
    pad = kernel_size // 2
    n_taps = kernel_size * kernel_size
    hw = h_out * w_out
    row_chunk = max(1, min(8, h_out))
    kernel = functools.partial(
        _dwconv_bn_silu_pool_kernel,
        ksize=kernel_size, stride=stride, pad=pad, h_in=H, w_in=W,
        h_out=h_out, w_out=w_out, hw_total=hw_total, row_chunk=row_chunk)
    # TODO(synk): grid=(B, n_row_tiles) with overlapping halo fetch for very
    #             large frames / more megacore parallelism on v7x.
    return pl.pallas_call(
        kernel,
        out_shape=(jax.ShapeDtypeStruct((B, hw_total, Cp), h.dtype),
                   jax.ShapeDtypeStruct((B, 1, Cp), jnp.float32)),
        grid_spec=pltpu.PrefetchScalarGridSpec(
            num_scalar_prefetch=0,
            grid=(B,),
            in_specs=[
                pl.BlockSpec((1, H, W, Cp), lambda b: (b, 0, 0, 0)),
                pl.BlockSpec((n_taps, Cp), lambda b: (0, 0)),
                pl.BlockSpec((1, Cp), lambda b: (0, 0)),
                pl.BlockSpec((1, Cp), lambda b: (0, 0)),
            ],
            out_specs=(
                pl.BlockSpec((1, hw_total, Cp), lambda b: (b, 0, 0)),
                pl.BlockSpec((1, 1, Cp), lambda b: (b, 0, 0)),
            ),
            scratch_shapes=[
                pltpu.VMEM((H + 2 * pad, W + 2 * pad, Cp), jnp.float32)],
        ),
        compiler_params=pltpu.CompilerParams(
            dimension_semantics=("parallel",),
            vmem_limit_bytes=_VMEM_LIMIT),
        cost_estimate=pl.CostEstimate(
            flops=2 * B * hw * Cp * n_taps,
            transcendentals=B * hw * Cp,
            bytes_accessed=(h.size * h.dtype.itemsize
                            + B * hw_total * Cp * h.dtype.itemsize
                            + 4 * B * Cp + 4 * (n_taps + 2) * Cp)),
    )(h, w_taps, scale, bias)


# --------------------------------------------------------------------------
# 3+4) SE gates + SE scale + 1x1 projection conv + BN (no act) + residual,
#      all fused into one kernel. The gate matmuls are tiny and recomputed
#      per tile, so there is no cross-tile state (both grid axes parallel).
# --------------------------------------------------------------------------
def _se_project_kernel(x_ref, pool_ref, w1_ref, b1_ref, w2_ref, b2_ref,
                       w_ref, scale_ref, bias_ref, *rest, use_residual):
    o_ref = rest[-1]
    # SE excitation gate: sigmoid(fc2(silu(fc1(pool)))), f32 throughout.
    p = pool_ref[0]                                                # (1, Cexp_p)
    hsq = jnp.dot(p, w1_ref[...], preferred_element_type=jnp.float32)
    hsq = hsq + b1_ref[...]
    hsq = hsq * jax.nn.sigmoid(hsq)                                # SiLU
    g = jnp.dot(hsq, w2_ref[...], preferred_element_type=jnp.float32)
    g = g + b2_ref[...]
    g = jax.nn.sigmoid(g)                                          # (1, Cexp_p)
    # NOTE: padded Cexp lanes of g equal sigmoid(0)=0.5; this is harmless ONLY
    # because the matching dw activation lanes AND the matching w_proj rows are
    # exactly zero (keep that invariant if the padding of b_se2/w_proj changes).
    xg = x_ref[0].astype(jnp.float32) * g                          # SE scale
    y = jnp.dot(xg.astype(x_ref.dtype), w_ref[...],
                preferred_element_type=jnp.float32)                # bf16 MXU
    y = y * scale_ref[...] + bias_ref[...]                         # BN, act=False
    if use_residual:
        # TODO(synk): StochasticDepth is identity at inference time.
        y = y + rest[0][0].astype(jnp.float32)
    o_ref[0] = y.astype(o_ref.dtype)


def _se_project(dw3, pooled, w1, b1, w2, b2, w_proj, scale, bias, res3, *,
                hw_tile):
    B, HWp, Cexp_p = dw3.shape
    Sq_p = w1.shape[1]
    Cout_p = w_proj.shape[1]
    use_res = res3 is not None
    n_tiles = HWp // hw_tile
    in_specs = [
        pl.BlockSpec((1, hw_tile, Cexp_p), lambda b, m: (b, m, 0)),
        pl.BlockSpec((1, 1, Cexp_p), lambda b, m: (b, 0, 0)),
        pl.BlockSpec((Cexp_p, Sq_p), lambda b, m: (0, 0)),
        pl.BlockSpec((1, Sq_p), lambda b, m: (0, 0)),
        pl.BlockSpec((Sq_p, Cexp_p), lambda b, m: (0, 0)),
        pl.BlockSpec((1, Cexp_p), lambda b, m: (0, 0)),
        pl.BlockSpec((Cexp_p, Cout_p), lambda b, m: (0, 0)),
        pl.BlockSpec((1, Cout_p), lambda b, m: (0, 0)),
        pl.BlockSpec((1, Cout_p), lambda b, m: (0, 0)),
    ]
    args = [dw3, pooled, w1, b1, w2, b2, w_proj, scale, bias]
    if use_res:
        in_specs.append(pl.BlockSpec((1, hw_tile, Cout_p),
                                     lambda b, m: (b, m, 0)))
        args.append(res3)
    bytes_res = res3.size * res3.dtype.itemsize if use_res else 0
    return pl.pallas_call(
        functools.partial(_se_project_kernel, use_residual=use_res),
        out_shape=jax.ShapeDtypeStruct((B, HWp, Cout_p), jnp.float32),
        grid_spec=pltpu.PrefetchScalarGridSpec(
            num_scalar_prefetch=0,
            grid=(B, n_tiles),
            in_specs=in_specs,
            out_specs=pl.BlockSpec((1, hw_tile, Cout_p),
                                   lambda b, m: (b, m, 0)),
        ),
        compiler_params=pltpu.CompilerParams(
            dimension_semantics=("parallel", "parallel"),
            vmem_limit_bytes=_VMEM_LIMIT),
        cost_estimate=pl.CostEstimate(
            flops=(2 * B * HWp * Cexp_p * Cout_p
                   + 4 * B * n_tiles * Cexp_p * Sq_p),
            transcendentals=B * n_tiles * (Sq_p + 2 * Cexp_p),
            bytes_accessed=(dw3.size * dw3.dtype.itemsize
                            + 4 * B * HWp * Cout_p
                            + bytes_res
                            + w_proj.size * w_proj.dtype.itemsize
                            + 4 * (Cexp_p * Sq_p * 2))),
    )(*args)


# --------------------------------------------------------------------------
# MBConv forward (inference): expansion -> depthwise -> SE -> projection (+res)
# --------------------------------------------------------------------------
def mbconv_forward(x_nchw, params, *, kernel_size, stride, exp, eps=1e-5,
                   compute_dtype=jnp.bfloat16):
    B, C_in, H, W = x_nchw.shape
    C_out = params["w_proj"].shape[1]
    C_exp = C_in * exp
    squeeze = max(1, C_in // 4)
    use_connection = (C_in == C_out) and (stride == 1)

    Cin_p, Cexp_p, Cout_p, Sq_p = (_rup(C_in), _rup(C_exp),
                                   _rup(C_out), _rup(squeeze))
    # NOTE: for tiny real channel counts (this demo's C_in=4) the 128-lane pad
    # means most of the MXU work / HBM traffic is zeros; production
    # EfficientNetV2 stages (>=24 channels) amortize this.

    # Single NCHW->NHWC transpose at the module boundary; channels padded to a
    # lane-dense multiple of 128 and cast once to bf16 for the MXU/DMA path.
    x_nhwc = jnp.transpose(x_nchw, (0, 2, 3, 1))
    x_p = _pad_axis(x_nhwc, 3, Cin_p).astype(compute_dtype)   # (B, H, W, Cin_p)

    # --- 1) expansion 1x1 conv + BN + SiLU (skipped when exp == 1) ----------
    if exp > 1:
        w_exp = _pad_axis(_pad_axis(params["w_exp"], 0, Cin_p), 1, Cexp_p)
        w_exp = w_exp.astype(compute_dtype)
        s1, b1 = _fold_bn(params["bn1_g"], params["bn1_b"],
                          params["bn1_m"], params["bn1_v"], eps, Cexp_p)
        M = B * H * W
        m_tile, Mp = _pick_row_tile(M)
        x2d = _pad_axis(x_p.reshape(M, Cin_p), 0, Mp)
        h2d = _pointwise_conv_bn(x2d, w_exp, s1, b1, act=True,
                                 m_tile=m_tile, out_dtype=compute_dtype)
        h = h2d[:M].reshape(B, H, W, Cexp_p)
    else:
        h = x_p                                  # identity (Cexp_p == Cin_p)

    # --- 2) depthwise KxK conv + BN + SiLU, fused global-average pool -------
    pad = kernel_size // 2      # matches PyTorch padding for odd kernel sizes
    H_out = (H + 2 * pad - kernel_size) // stride + 1
    W_out = (W + 2 * pad - kernel_size) // stride + 1
    HWo = H_out * W_out
    hw_tile, HWp = _pick_row_tile(HWo)
    w_dw = _pad_axis(params["w_dw"].reshape(kernel_size * kernel_size, C_exp),
                     1, Cexp_p)
    s2, b2 = _fold_bn(params["bn2_g"], params["bn2_b"],
                      params["bn2_m"], params["bn2_v"], eps, Cexp_p)
    dw3, pooled = _depthwise_conv_bn_silu_pool(
        h, w_dw, s2, b2, kernel_size=kernel_size, stride=stride,
        h_out=H_out, w_out=W_out, hw_total=HWp)   # (B, HWp, Cexp_p), (B,1,Cexp_p)

    # --- 3+4) SE gates + SE scale + projection 1x1 + BN + residual ----------
    w1 = _pad_axis(_pad_axis(params["w_se1"], 0, Cexp_p), 1, Sq_p)
    b_se1 = _pad_axis(params["b_se1"], 0, Sq_p).reshape(1, Sq_p)
    w2 = _pad_axis(_pad_axis(params["w_se2"], 0, Sq_p), 1, Cexp_p)
    b_se2 = _pad_axis(params["b_se2"], 0, Cexp_p).reshape(1, Cexp_p)
    w_proj = _pad_axis(_pad_axis(params["w_proj"], 0, Cexp_p), 1, Cout_p)
    w_proj = w_proj.astype(compute_dtype)
    s3, b3 = _fold_bn(params["bn3_g"], params["bn3_b"],
                      params["bn3_m"], params["bn3_v"], eps, Cout_p)
    if use_connection:
        # stride==1 and C_in==C_out -> Cin_p == Cout_p, H*W == HWo
        res3 = _pad_axis(x_p.reshape(B, H * W, Cout_p), 1, HWp)
    else:
        res3 = None
    y3 = _se_project(dw3, pooled, w1, b_se1, w2, b_se2, w_proj, s3, b3, res3,
                     hw_tile=hw_tile)            # (B, HWp, Cout_p) f32

    y = y3[:, :HWo, :C_out].reshape(B, H_out, W_out, C_out)
    return jnp.transpose(y, (0, 3, 1, 2))        # back to NCHW


# --------------------------------------------------------------------------
# Pure-JAX reference (inference mode), for verification.
# --------------------------------------------------------------------------
def _reference_mbconv(x_nchw, p, *, kernel_size, stride, exp, eps=1e-5):
    hp = jax.lax.Precision.HIGHEST
    x = jnp.transpose(x_nchw, (0, 2, 3, 1))
    B, H, W, C_in = x.shape
    C_out = p["w_proj"].shape[1]
    C_exp = C_in * exp

    def bn(y, g, b, m, v):
        s = g / jnp.sqrt(v + eps)
        return y * s + (b - m * s)

    h = x
    if exp > 1:
        h = jnp.einsum("bhwc,cd->bhwd", h, p["w_exp"], precision=hp)
        h = bn(h, p["bn1_g"], p["bn1_b"], p["bn1_m"], p["bn1_v"])
        h = h * jax.nn.sigmoid(h)

    pad = kernel_size // 2
    dw = jax.lax.conv_general_dilated(
        h, p["w_dw"].reshape(kernel_size, kernel_size, 1, C_exp),
        window_strides=(stride, stride),
        padding=((pad, pad), (pad, pad)),
        dimension_numbers=("NHWC", "HWIO", "NHWC"),
        feature_group_count=C_exp,
        precision=hp)
    dw = bn(dw, p["bn2_g"], p["bn2_b"], p["bn2_m"], p["bn2_v"])
    dw = dw * jax.nn.sigmoid(dw)

    pool = jnp.mean(dw, axis=(1, 2))
    s = jnp.dot(pool, p["w_se1"], precision=hp) + p["b_se1"]
    s = s * jax.nn.sigmoid(s)
    s = jnp.dot(s, p["w_se2"], precision=hp) + p["b_se2"]
    s = jax.nn.sigmoid(s)
    dw = dw * s[:, None, None, :]

    y = jnp.einsum("bhwc,cd->bhwd", dw, p["w_proj"], precision=hp)
    y = bn(y, p["bn3_g"], p["bn3_b"], p["bn3_m"], p["bn3_v"])
    if C_in == C_out and stride == 1:
        y = y + x
    return jnp.transpose(y, (0, 3, 1, 2))


if __name__ == "__main__":
    # MBConv(in_channels=4, out_channels=4, kernel_size=3, stride=1, exp=4,
    #        p_sd=0.2) at small shapes; residual connection is active.
    B, C_in, H, W = 2, 4, 16, 16
    C_out = 4
    kernel_size, stride, exp = 3, 1, 4
    C_exp = C_in * exp
    squeeze = max(1, C_in // 4)

    keys = iter(jax.random.split(jax.random.PRNGKey(0), 32))

    def rn(shape, scale=0.3):
        return scale * jax.random.normal(next(keys), shape, dtype=jnp.float32)

    x = jax.random.normal(next(keys), (B, C_in, H, W), dtype=jnp.float32)

    params = dict(
        # expansion 1x1 conv (PyTorch weight (Cexp, Cin, 1, 1) stored as (Cin, Cexp))
        w_exp=rn((C_in, C_exp)),
        bn1_g=1.0 + rn((C_exp,), 0.1), bn1_b=rn((C_exp,), 0.1),
        bn1_m=rn((C_exp,), 0.1), bn1_v=jnp.abs(rn((C_exp,), 1.0)) + 0.5,
        # depthwise conv (PyTorch weight (Cexp, 1, KH, KW) stored as (KH, KW, Cexp))
        w_dw=rn((kernel_size, kernel_size, C_exp)),
        bn2_g=1.0 + rn((C_exp,), 0.1), bn2_b=rn((C_exp,), 0.1),
        bn2_m=rn((C_exp,), 0.1), bn2_v=jnp.abs(rn((C_exp,), 1.0)) + 0.5,
        # SE block (1x1 convs with bias)
        w_se1=rn((C_exp, squeeze)), b_se1=rn((squeeze,), 0.1),
        w_se2=rn((squeeze, C_exp)), b_se2=rn((C_exp,), 0.1),
        # projection 1x1 conv
        w_proj=rn((C_exp, C_out)),
        bn3_g=1.0 + rn((C_out,), 0.1), bn3_b=rn((C_out,), 0.1),
        bn3_m=rn((C_out,), 0.1), bn3_v=jnp.abs(rn((C_out,), 1.0)) + 0.5,
    )

    out = mbconv_forward(x, params, kernel_size=kernel_size, stride=stride,
                         exp=exp)
    out = jax.block_until_ready(out)

    ref = _reference_mbconv(x, params, kernel_size=kernel_size, stride=stride,
                            exp=exp)
    ref = jax.block_until_ready(ref)

    assert out.shape == (B, C_out, H, W), out.shape
    max_err = float(jnp.max(jnp.abs(out - ref)))
    # Tolerance is dtype-aware: the kernel path runs bf16 on the MXU/DMA
    # (f32 accumulate), the reference is f32 HIGHEST precision.
    assert jnp.allclose(out, ref, rtol=5e-2, atol=1e-1), max_err

    print("KERNEL_OK")
</pallas_src>

<mosaic_0001>
module attributes {stable_mosaic.version = 11 : i64} {
  func.func @_pointwise_kernel(%arg0: i32, %arg1: memref<256x128xbf16, #tpu.memory_space<vmem>>, %arg2: memref<128x128xbf16, #tpu.memory_space<vmem>>, %arg3: memref<1x128xf32, #tpu.memory_space<vmem>>, %arg4: memref<1x128xf32, #tpu.memory_space<vmem>>, %arg5: memref<256x128xbf16, #tpu.memory_space<vmem>>) attributes {dimension_semantics = [#tpu.dimension_semantics<parallel>], iteration_bounds = array<i64: 2>, scalar_prefetch = 0 : i64, scratch_operands = 0 : i64, tpu.core_type = #tpu.core_type<tc>, window_params = [{transform_indices = @transform_0, window_bounds = array<i64: 256, 128>}, {pipeline_mode = #tpu.pipeline_mode<synchronous>, transform_indices = @transform_1, window_bounds = array<i64: 128, 128>}, {pipeline_mode = #tpu.pipeline_mode<synchronous>, transform_indices = @transform_2, window_bounds = array<i64: 1, 128>}, {pipeline_mode = #tpu.pipeline_mode<synchronous>, transform_indices = @transform_3, window_bounds = array<i64: 1, 128>}, {transform_indices = @transform_4, window_bounds = array<i64: 256, 128>}]} {
    %c0 = arith.constant 0 : index
    %c0_0 = arith.constant 0 : index
    %0 = vector.load %arg1[%c0, %c0_0] : memref<256x128xbf16, #tpu.memory_space<vmem>>, vector<256x128xbf16>
    %c0_1 = arith.constant 0 : index
    %c0_2 = arith.constant 0 : index
    %1 = vector.load %arg2[%c0_1, %c0_2] : memref<128x128xbf16, #tpu.memory_space<vmem>>, vector<128x128xbf16>
    %cst = arith.constant dense<0.000000e+00> : vector<256x128xf32>
    %2 = tpu.matmul %0, %1, %cst {dimension_numbers = #tpu.dot_dimension_numbers<[1], [0], [0], [1], [0, 0, 1, 1], [], []>} : vector<256x128xbf16>, vector<128x128xbf16>, vector<256x128xf32> -> vector<256x128xf32>
    %c0_3 = arith.constant 0 : index
    %c0_4 = arith.constant 0 : index
    %3 = vector.load %arg3[%c0_3, %c0_4] : memref<1x128xf32, #tpu.memory_space<vmem>>, vector<1x128xf32>
    %4 = vector.broadcast %3 : vector<1x128xf32> to vector<256x128xf32>
    %5 = arith.mulf %2, %4 : vector<256x128xf32>
    %c0_5 = arith.constant 0 : index
    %c0_6 = arith.constant 0 : index
    %6 = vector.load %arg4[%c0_5, %c0_6] : memref<1x128xf32, #tpu.memory_space<vmem>>, vector<1x128xf32>
    %7 = vector.broadcast %6 : vector<1x128xf32> to vector<256x128xf32>
    %8 = arith.addf %5, %7 : vector<256x128xf32>
    %9 = arith.negf %8 : vector<256x128xf32>
    %10 = math.exp %9 : vector<256x128xf32>
    %cst_7 = arith.constant 1.000000e+00 : f32
    %11 = vector.broadcast %cst_7 : f32 to vector<256x128xf32>
    %12 = arith.addf %11, %10 : vector<256x128xf32>
    %13 = arith.divf %11, %12 : vector<256x128xf32>
    %14 = arith.mulf %8, %13 : vector<256x128xf32>
    %15 = arith.truncf %14 : vector<256x128xf32> to vector<256x128xbf16>
    %c0_8 = arith.constant 0 : index
    %c0_9 = arith.constant 0 : index
    %16 = vector.load %arg5[%c0_8, %c0_9] : memref<256x128xbf16, #tpu.memory_space<vmem>>, vector<256x128xbf16>
    tpu.vector_store %arg5[%c0_8, %c0_9], %15 {strides = array<i32>} : memref<256x128xbf16, #tpu.memory_space<vmem>>, vector<256x128xbf16>,
    return
  }
  func.func @transform_0(%arg0: i32) -> (i32, i32) {
    %c0_i32 = arith.constant 0 : i32
    %c0_i32_0 = arith.constant 0 : i32
    return %arg0, %c0_i32 : i32, i32
  }
  func.func @transform_1(%arg0: i32) -> (i32, i32) {
    %c0_i32 = arith.constant 0 : i32
    %c0_i32_0 = arith.constant 0 : i32
    %c0_i32_1 = arith.constant 0 : i32
    return %c0_i32, %c0_i32_0 : i32, i32
  }
  func.func @transform_2(%arg0: i32) -> (i32, i32) {
    %c0_i32 = arith.constant 0 : i32
    %c0_i32_0 = arith.constant 0 : i32
    %c0_i32_1 = arith.constant 0 : i32
    return %c0_i32, %c0_i32_0 : i32, i32
  }
  func.func @transform_3(%arg0: i32) -> (i32, i32) {
    %c0_i32 = arith.constant 0 : i32
    %c0_i32_0 = arith.constant 0 : i32
    %c0_i32_1 = arith.constant 0 : i32
    return %c0_i32, %c0_i32_0 : i32, i32
  }
  func.func @transform_4(%arg0: i32) -> (i32, i32) {
    %c0_i32 = arith.constant 0 : i32
    %c0_i32_0 = arith.constant 0 : i32
    return %arg0, %c0_i32 : i32, i32
  }
}

</mosaic_0001>

<bundles_post_ra>
// kernel: tpu_custom_call.1
= control target key start
LH: loop header
LB: loop body
LE: loop exit
PB: predicated region body
PF: predicated region fallthrough
CT: control target
= control target key end

     0   :  { %9 = vsyncpa [#allocation3], 0  ;;  %s2324_s0 = inlined_call_operand.hbm [shape: bf16[512,128], index: 0, kind: input, shape index: {}]   ;;  %s2325_s1 = inlined_call_operand.hbm [shape: bf16[128,128], index: 1, kind: input, shape index: {}]   ;;  %s2326_s2 = inlined_call_operand.vmem [shape: f32[1,128], index: 2, kind: input, shape index: {}]   ;;  %s2327_s3 = inlined_call_operand.vmem [shape: f32[1,128], index: 3, kind: input, shape index: {}]   ;;  %s2328_s4 = inlined_call_operand.hbm [shape: bf16[512,128], index: 4, kind: output, shape index: {}]  }
   0x1   :  { %11 = vsyncpa [#allocation3 + $0x1], 0 }
   0x2   :  { %12 = vsyncpa [#allocation6], 0 }
   0x3   :  { %13 = vsyncpa [#allocation4], 0 }
   0x4   :  { %15 = vsyncpa [#allocation4 + $0x1], 0  ;;  %s1844_s15 = smov 0   ;;  %s1846_s16 = smov 0  }
   0x5   :  { %s1848_s17 = smov 0   ;;  %s1850_s18 = smov 0  }
   0x6 LB: > { %s1865_s19 = sadd.s32 4294967295, %s1810_s18   ;;  %s1146_s20 = sadd.s32 4294967294, %s1810_s18   ;;  %s1810_s18 = sphi %s1850_s18, %s2348_s18   ;;  %s1806_s17 = sphi %s1848_s17, %s2347_s17   ;;  %s1802_s16 = sphi %s1846_s16, %s2346_s16   ;;  %s1798_s15 = sphi %s1844_s15, %s2345_s15  }
   0x7   : > { %p41_p0 = scmp.ne.s32.totalorder %s1802_s16, %s1798_s15  ;;  %p2329_p1 = scmp.eq.s32.totalorder %s1865_s19, 0 }
   0x8   : > { %p134_p3 = scmp.eq.s32.totalorder %s1146_s20, 1  ;;  %p1147_p5 = scmp.ge.s32.totalorder %s1810_s18, 1 }
   0x9   : > { %p1874_p4 = por %p2329_p1, %p41_p0  ;;  %p141_p7 = scmp.lt.s32.totalorder %s1810_s18, 3 }
   0xa   : > { %p1879_p6 = por %p134_p3, %p41_p0  ;;  %s1812_s24 = smov [#allocation5]  }
   0xb   : > { %s2332_s21 = scalar_select %p1874_p4, 1, 0 }
   0xc   : > { %s2333_s22 = scalar_select %p1879_p6, 1, 0 }
   0xd   : > { %p1884_p8 = pnand %p1147_p5, %p141_p7  ;;  %s153_s25 = sshll.u32 %s1812_s24, 4  ;;  %s1888_s25 = int_to_ptr.vmem [resolvable:$true] %s153_s25 }
   0xe   : > { %s1900_s27 = sadd.s32 1, %s1810_s18   ;;  %s28_s28 = sadd.s32 1, %s1806_s17 }
   0xf   : > { %s2334_s23 = scalar_select %p1884_p8, 1, 0 }
  0x10   : > { %p1477_p9 = pneg %p1884_p8  ;;  %s25_s29 = ssub.s32 %s1810_s18, %s1900_s27 }
  0x11   : > { %s1682_s6 = scalar_lea.hbm %s2325_s1, 1024 }
  0x12   : > { %p1895_p11 = pnand %p1477_p9, %p2329_p1  ;;  %p1683_p12 = scmp.ne.s32.totalorder %s2325_s1, %s1682_s6 }
  0x13   : > { %p1689_p5 = scmp.lt.u32.totalorder %s1682_s6, %s2325_s1 }
  0x14   : > { %p1684_p13 = pneg %p1895_p11 }
  0x16   : > { %p1685_p0 = pnand %p1684_p13, %p1683_p12 }
  0x18   : > { %p1686_p3 = pneg %p1685_p0 }
  0x1a   : > { %p1691_p7 = pnand %p1689_p5, %p1686_p3 }
  0x1c   : > { %1694 = shalt.err (!%p1691_p7)
}
  0x1d   : > { %s1695_s11 = scalar_lea.vmem %s1888_s25, 1024  ;;  %p1703_p2 = scmp.lt.s32.totalorder %s1888_s25, %s1888_s25 }
  0x1e   : > { %p1696_p9 = scmp.ne.s32.totalorder %s1888_s25, %s1695_s11  ;;  %p1704_p6 = scmp.lt.s32.totalorder %s1695_s11, %s1695_s11 }
  0x20   : > { %p1698_p10 = pnand %p1696_p9, %p1684_p13  ;;  %p1705_p4 = por %p1704_p6, %p1703_p2 }
  0x22   : > { %p1699_p1 = pneg %p1698_p10 }
  0x24   : > { %p1706_p8 = pnand %p1705_p4, %p1699_p1 }
  0x26   : > { %1709 = shalt.err (!%p1706_p8)
}
  0x27   : > { %s1813_s12 = smov 64   ;;  %s1814_s13 = smov 4  }
  0x28   : > { %1480 = dma.hbm_to_vmem [thread:$0]  (!%p1895_p11), %s2325_s1, 1024, %s1888_s25, [#allocation6], %s1813_s12, %s1813_s12, %s1814_s13  }
  0x29   : > { %p26_p1 = scmp.eq.s32.totalorder %s25_s29, 0  ;;  %p35_p2 = scmp.ne.s32.totalorder %s1806_s17, %s1802_s16 }
  0x2a   : > { %p36_p4 = scmp.eq.s32.totalorder %s1810_s18, 0  ;;  %p1490_p6 = scmp.lt.s32.totalorder %s1810_s18, 2 }
  0x2b   : > { %s1934_s24 = scalar_select %p26_p1, %s1806_s17, %s28_s28  }
  0x2c   : > { %p37_p8 = por %p36_p4, %p35_p2  ;;  %p2336_p10 = scmp.eq.s32.totalorder %s1865_s19, 1 }
  0x2d   : > { %s173_s26 = sand.u32 1, %s1806_s17   ;;  %s1252_s5 = sshll.u32 %s1810_s18, 11 }
  0x2e   : > { %p1938_p12 = por %p2336_p10, %p35_p2  ;;  %s1150_s6 = sshll.u32 %s173_s26, 7 }
  0x2f   : > { %s1947_s9 = scalar_lea.hbm %s2324_s0, %s1252_s5  ;;  %s177_s25 = scalar_lea.vmem [#allocation2], %s1150_s6 }
  0x30   : > { %s184_s28 = sshll.u32 %s177_s25, 4  ;;  %p1949_p11 = pnand %p1490_p6, %p37_p8  ;;  %s1953_s28 = int_to_ptr.vmem [resolvable:$true] %s184_s28 }
  0x31   : > { %s1955_s10 = scalar_lea.sflag [#allocation3], %s173_s26  ;;  %s1710_s11 = scalar_lea.hbm %s1947_s9, 2048 }
  0x32   : > { %p1711_p13 = scmp.ne.s32.totalorder %s1947_s9, %s1710_s11  ;;  %p1712_p0 = pneg %p1949_p11 }
  0x33   : > { %s1715_s5 = scalar_lea.hbm %s2324_s0, 4096  ;;  %p1716_p7 = scmp.lt.u32.totalorder %s1947_s9, %s2324_s0 }
  0x34   : > { %p1713_p3 = pnand %p1712_p0, %p1711_p13  ;;  %p1717_p9 = scmp.lt.u32.totalorder %s1715_s5, %s1710_s11 }
  0x35   : > { %p1719_p2 = scmp.lt.u32.totalorder %s1710_s11, %s1947_s9 }
  0x36   : > { %p1714_p5 = pneg %p1713_p3  ;;  %p1718_p1 = por %p1717_p9, %p1716_p7 }
  0x38   : > { %p1720_p4 = por %p1719_p2, %p1718_p1 }
  0x3a   : > { %p1721_p6 = pnand %p1720_p4, %p1714_p5 }
  0x3c   : > { %1724 = shalt.err (!%p1721_p6)
}
  0x3d   : > { %s1725_s26 = scalar_lea.vmem %s1953_s28, 2048  ;;  %s1815_s8 = smov [#allocation2]  }
  0x3e   : > { %p1726_p8 = scmp.ne.s32.totalorder %s1953_s28, %s1725_s26  ;;  %s1730_s25 = sshll.u32 %s1815_s8, 4  ;;  %s1731_s25 = int_to_ptr.vmem [resolvable:$false] %s1730_s25 }
  0x3f   : > { %s1732_s14 = scalar_lea.vmem %s1731_s25, 4096  ;;  %p1733_p3 = scmp.lt.s32.totalorder %s1953_s28, %s1731_s25 }
  0x40   : > { %p1728_p10 = pnand %p1726_p8, %p1712_p0  ;;  %p1734_p7 = scmp.lt.s32.totalorder %s1732_s14, %s1725_s26 }
  0x42   : > { %p1729_p13 = pneg %p1728_p10  ;;  %p1735_p9 = por %p1734_p7, %p1733_p3 }
  0x44   : > { %p1736_p1 = pnand %p1735_p9, %p1729_p13 }
  0x46   : > { %1739 = shalt.err (!%p1736_p1)
}
  0x47   : > { %1484 = dma.hbm_to_vmem [thread:$0]  (!%p1949_p11), %s1947_s9, 2048, %s1953_s28, %s1955_s10, %s1813_s12, %s1813_s12, %s1814_s13  }
  0x48   : > { %p2339_p0 = scmp.ne.s32.totalorder %s2334_s23, 0 }
  0x49   : > { %s1989_s11 = sand.u32 (!%p2339_p0), 1, %s1802_s16   ;;  %p2340_p5 = scmp.ne.s32.totalorder (!%p2339_p0), %s2332_s21, 0 }
  0x4a   : > { %196 = sbr.rel (%p2339_p0) target bundleno = 436 (0x1b4), region = 36  ;;  %s1154_s20 = sshll.u32 (!%p2339_p0), %s1989_s11, 7 }
  0x4b   : > { %s199_s5 = scalar_lea.sflag (!%p2339_p0), [#allocation3], %s1989_s11  ;;  %s1995_s29 = scalar_lea.vmem (!%p2339_p0), [#allocation2], %s1154_s20 }
  0x51   : > { %1785 = dma.done.wait (%p2340_p5), %s199_s5, 2048  }
  0x52   : > { %1787 = vsyncadd (%p2340_p5), %s199_s5, 4294965248  ;;  %p2341_p11 = scmp.eq.s32.totalorder %s1865_s19, 0 }
  0x54   : > { %1789 = dma.done.wait (%p2341_p11), [#allocation6], 1024   ;;  %p2342_p2 = pmov %p2341_p11 }
  0x55   : > { %v1530_v0 = vld [vmem:[#allocation5] sm:$0xff]   ;;  %v1531_v1 = vld [vmem:[#allocation5 + $0x8] sm:$0xff]   ;;  %v1532_v2 = vld [vmem:[#allocation5 + $0x10] sm:$0xff]   ;;  %s2185_s9 = scalar_lea.vmem [#allocation7], %s1154_s20  ;;  %s1285_s28 = sshll.u32 %s1865_s19, 11 }
  0x56   : > { %1791 = vsyncadd (%p2342_p2), [#allocation6], 4294966272  ;;  %1405 = vmatprep.subr.bf16.mxu0 %v1530_v0  ;;  %1453 = vmatprep.subr.bf16.mxu1 %v1530_v0  ;;  %v1533_v3 = vld [vmem:[#allocation5 + $0x18] sm:$0xff]   ;;  %v1538_v4 = vld [vmem:[%s1995_s29] sm:$0xff]   ;;  %s1063_s10 = sshll.u32 %s2185_s9, 4  ;;  %s2275_s19 = scalar_lea.hbm %s2328_s4, %s1285_s28  ;;  %s2277_s10 = int_to_ptr.vmem [resolvable:$true] %s1063_s10 }
  0x57   : > { %1406 = vmatpush3.bf16.msra.mxu0 %v1530_v0  ;;  %1461 = vmatpush3.bf16.msra.mxu1 %v1530_v0  ;;  %v1539_v5 = vld [vmem:[%s1995_s29 + $0x40] sm:$0xff]   ;;  %v1535_v7 = vld [vmem:[#allocation5 + $0x28] sm:$0xff]   ;;  %v1536_v8 = vld [vmem:[#allocation5 + $0x30] sm:$0xff]   ;;  %s1050_s26 = scalar_lea.sflag [#allocation4], %s1989_s11  ;;  %s1740_s8 = scalar_lea.vmem %s2277_s10, 2048 }
  0x58   : > { %1407 = vmatprep.subr.bf16.mxu0 %v1531_v1  ;;  %1454 = vmatprep.subr.bf16.mxu1 %v1531_v1  ;;  %v1534_v6 = vld [vmem:[#allocation5 + $0x20] sm:$0xff]   ;;  %v1537_v9 = vld [vmem:[#allocation5 + $0x38] sm:$0xff]   ;;  %v1540_v10 = vld [vmem:[%s1995_s29 + $0x8] sm:$0xff]   ;;  %p1741_p4 = scmp.ne.s32.totalorder %s2277_s10, %s1740_s8  ;;  %s1816_s25 = smov [#allocation7]  }
  0x59   : > { %1421 = vmatprep.mubr.bf16.mxu0 %v1538_v4  ;;  %1437 = vmatprep.mubr.bf16.mxu1 %v1539_v5  ;;  %v1541_v11 = vld [vmem:[%s1995_s29 + $0x48] sm:$0xff]   ;;  %v1542_v12 = vld [vmem:[%s1995_s29 + $0x10] sm:$0xff]   ;;  %v1544_v14 = vld [vmem:[%s1995_s29 + $0x18] sm:$0xff]   ;;  %s1744_s14 = sshll.u32 %s1816_s25, 4  ;;  %s1745_s14 = int_to_ptr.vmem [resolvable:$false] %s1744_s14 }
  0x5a   : > { %v1543_v13 = vld [vmem:[%s1995_s29 + $0x50] sm:$0xff]   ;;  %v1545_v15 = vld [vmem:[%s1995_s29 + $0x58] sm:$0xff]   ;;  %v1546_v16 = vld [vmem:[%s1995_s29 + $0x20] sm:$0xff]   ;;  %p1742_p6 = pnand %p1741_p4, %p1938_p12  ;;  %s1746_s20 = scalar_lea.vmem %s1745_s14, 4096 }
  0x5b   : > { %1408 = vmatpush3.bf16.msra.mxu0 %v1531_v1  ;;  %1462 = vmatpush3.bf16.msra.mxu1 %v1531_v1  ;;  %v1547_v17 = vld [vmem:[%s1995_s29 + $0x60] sm:$0xff]   ;;  %v1548_v18 = vld [vmem:[%s1995_s29 + $0x28] sm:$0xff]   ;;  %v1550_v20 = vld [vmem:[%s1995_s29 + $0x30] sm:$0xff]   ;;  %p1747_p10 = scmp.lt.s32.totalorder %s2277_s10, %s1745_s14  ;;  %p1748_p13 = scmp.lt.s32.totalorder %s1746_s20, %s1740_s8 }
  0x5c   : > { %1409 = vmatprep.subr.bf16.mxu0 %v1532_v2  ;;  %1455 = vmatprep.subr.bf16.mxu1 %v1532_v2  ;;  %v1549_v19 = vld [vmem:[%s1995_s29 + $0x68] sm:$0xff]   ;;  %v1551_v21 = vld [vmem:[%s1995_s29 + $0x70] sm:$0xff]   ;;  %v1552_v22 = vld [vmem:[%s1995_s29 + $0x38] sm:$0xff]   ;;  %p1743_p8 = pneg %p1742_p6 }
  0x5d   : > { %v1553_v23 = vld [vmem:[%s1995_s29 + $0x78] sm:$0xff]   ;;  %v2024_v24 = vld [vmem:[%s2326_s2] ss:$0 sm:$0xff]  ;;  %p1749_p3 = por %p1748_p13, %p1747_p10 }
  0x5e   : > { %v2029_v26 = vld [vmem:[%s2327_s3] ss:$0 sm:$0xff] }
  0x5f   : > { %1410 = vmatpush3.bf16.msra.mxu0 %v1532_v2  ;;  %1463 = vmatpush3.bf16.msra.mxu1 %v1532_v2  ;;  %p1750_p7 = pnand %p1749_p3, %p1743_p8 }
  0x60   : > { %1411 = vmatprep.subr.bf16.mxu0 %v1533_v3  ;;  %1456 = vmatprep.subr.bf16.mxu1 %v1533_v3 }
  0x63   : > { %1412 = vmatpush3.bf16.msra.mxu0 %v1533_v3  ;;  %1464 = vmatpush3.bf16.msra.mxu1 %v1533_v3 }
  0x64   : > { %1413 = vmatprep.subr.bf16.mxu0 %v1534_v6  ;;  %1457 = vmatprep.subr.bf16.mxu1 %v1534_v6 }
  0x67   : > { %1414 = vmatpush3.bf16.msra.mxu0 %v1534_v6  ;;  %1465 = vmatpush3.bf16.msra.mxu1 %v1534_v6 }
  0x68   : > { %1415 = vmatprep.subr.bf16.mxu0 %v1535_v7  ;;  %1458 = vmatprep.subr.bf16.mxu1 %v1535_v7 }
  0x6b   : > { %1416 = vmatpush3.bf16.msra.mxu0 %v1535_v7  ;;  %1466 = vmatpush3.bf16.msra.mxu1 %v1535_v7 }
  0x6c   : > { %1417 = vmatprep.subr.bf16.mxu0 %v1536_v8  ;;  %1459 = vmatprep.subr.bf16.mxu1 %v1536_v8 }
  0x6f   : > { %1418 = vmatpush3.bf16.msra.mxu0 %v1536_v8  ;;  %1467 = vmatpush3.bf16.msra.mxu1 %v1536_v8 }
  0x70   : > { %1419 = vmatprep.subr.bf16.mxu0 %v1537_v9  ;;  %1460 = vmatprep.subr.bf16.mxu1 %v1537_v9 }
  0x73   : > { %1420 = vmatpush3.bf16.msra.mxu0 %v1537_v9  ;;  %1468 = vmatpush3.bf16.msra.mxu1 %v1537_v9 }
  0x76   : > { %1422 = vmatmul.mubr.bf16.vlgmr.msra.gmra.mrb[0].mxu0 %v1540_v10  ;;  %1438 = vmatmul.mubr.bf16.vlgmr.msra.gmra.mrb[0].mxu1 %v1541_v11 }
  0x77   : > { %1425 = vmatprep.mubr.bf16.mxu0 %v1542_v12  ;;  %1441 = vmatprep.mubr.bf16.mxu1 %v1543_v13 }
  0x7e   : > { %1426 = vmatmul.mubr.bf16.gmra.mrb[4].mxu0 %v1544_v14  ;;  %1442 = vmatmul.mubr.bf16.gmra.mrb[4].mxu1 %v1545_v15 }
  0x7f   : > { %1429 = vmatprep.mubr.bf16.mxu0 %v1546_v16  ;;  %1445 = vmatprep.mubr.bf16.mxu1 %v1547_v17 }
  0x86   : > { %1430 = vmatmul.mubr.bf16.gmra.mrb[8].mxu0 %v1548_v18  ;;  %1446 = vmatmul.mubr.bf16.gmra.mrb[8].mxu1 %v1549_v19 }
  0x87   : > { %1433 = vmatprep.mubr.bf16.mxu0 %v1550_v20  ;;  %1449 = vmatprep.mubr.bf16.mxu1 %v1551_v21 }
  0x8e   : > { %1434 = vmatmul.mubr.bf16.gmra.mrb[12].mxu0 %v1552_v22  ;;  %1450 = vmatmul.mubr.bf16.gmra.mrb[12].mxu1 %v1553_v23 }
 0x149   : > { %v1423_v25 = vpop.f32.mrb[0].mxu0  ;;  %v1439_v27 = vpop.f32.mrb[0].mxu1 }
 0x14a   : > { %v596_v28 = vmul.f32 %v1423_v25, %v2024_v24  ;;  %v612_v29 = vmul.f32 %v1439_v27, %v2024_v24  ;;  %v460_v30 = vpop.f32.mrb[1].mxu0  ;;  %v524_v31 = vpop.f32.mrb[1].mxu1 }
 0x14b   : > { %v594_v32 = vmul.f32 %v2024_v24, %v460_v30  ;;  %v610_v33 = vmul.f32 %v2024_v24, %v524_v31  ;;  %v1424_v34 = vpop.f32.mrb[2].mxu0  ;;  %v1440_v35 = vpop.f32.mrb[2].mxu1 }
 0x14c   : > { %v2036_v36 = vadd.f32 %v2029_v26, %v596_v28  ;;  %v2039_v37 = vadd.f32 %v2029_v26, %v612_v29  ;;  %v597_v38 = vmul.f32 %v1424_v34, %v2024_v24  ;;  %v613_v39 = vmul.f32 %v1440_v35, %v2024_v24  ;;  %v463_v40 = vpop.f32.mrb[3].mxu0  ;;  %v527_v41 = vpop.f32.mrb[3].mxu1 }
 0x14d   : > { %v2044_v42 = vadd.f32 %v2029_v26, %v594_v32  ;;  %v2047_v43 = vadd.f32 %v2029_v26, %v610_v33  ;;  %v595_v44 = vmul.f32 %v2024_v24, %v463_v40  ;;  %v611_v45 = vmul.f32 %v2024_v24, %v527_v41 }
 0x14e   : > { %v1185_v46 = vmul.f32 -1.442695, %v2036_v36  ;;  %v1201_v47 = vmul.f32 -1.442695, %v2039_v37  ;;  %v2054_v48 = vadd.f32 %v2029_v26, %v597_v38  ;;  %v2057_v49 = vadd.f32 %v2029_v26, %v613_v39 }
 0x14f   : > { %v1183_v50 = vmul.f32 -1.442695, %v2044_v42  ;;  %v1199_v51 = vmul.f32 -1.442695, %v2047_v43  ;;  %v2062_v52 = vadd.f32 %v2029_v26, %v595_v44  ;;  %v2065_v53 = vadd.f32 %v2029_v26, %v611_v45 }
 0x150   : > { %1554 = vpow2.f32 %v1185_v46  ;;  %v1186_v54 = vmul.f32 -1.442695, %v2054_v48  ;;  %v1202_v55 = vmul.f32 -1.442695, %v2057_v49 }
 0x151   : > { %1556 = vpow2.f32 %v1201_v47  ;;  %v1427_v56 = vpop.f32.mrb[4].mxu0  ;;  %v1443_v57 = vpop.f32.mrb[4].mxu1  ;;  %v1184_v58 = vmul.f32 -1.442695, %v2062_v52  ;;  %v1200_v63 = vmul.f32 -1.442695, %v2065_v53 }
 0x152   : > { %1558 = vpow2.f32 %v1183_v50  ;;  %v600_v59 = vmul.f32 %v1427_v56, %v2024_v24  ;;  %v616_v60 = vmul.f32 %v1443_v57, %v2024_v24  ;;  %v476_v61 = vpop.f32.mrb[5].mxu0  ;;  %v540_v62 = vpop.f32.mrb[5].mxu1 }
 0x153   : > { %1560 = vpow2.f32 %v1199_v51  ;;  %v598_v0 = vmul.f32 %v2024_v24, %v476_v61  ;;  %v614_v1 = vmul.f32 %v2024_v24, %v540_v62  ;;  %v1428_v2 = vpop.f32.mrb[6].mxu0  ;;  %v1444_v3 = vpop.f32.mrb[6].mxu1 }
 0x154   : > { %1562 = vpow2.f32 %v1186_v54  ;;  %v2076_v4 = vadd.f32 %v2029_v26, %v600_v59  ;;  %v2079_v5 = vadd.f32 %v2029_v26, %v616_v60  ;;  %v601_v6 = vmul.f32 %v1428_v2, %v2024_v24  ;;  %v479_v7 = vpop.f32.mrb[7].mxu0  ;;  %v543_v8 = vpop.f32.mrb[7].mxu1 }
 0x155   : > { %1564 = vpow2.f32 %v1202_v55  ;;  %v2083_v9 = vadd.f32 %v2029_v26, %v598_v0  ;;  %v2086_v10 = vadd.f32 %v2029_v26, %v614_v1  ;;  %v617_v11 = vmul.f32 %v1444_v3, %v2024_v24 }
 0x156   : > { %1566 = vpow2.f32 %v1184_v58  ;;  %v1189_v12 = vmul.f32 -1.442695, %v2076_v4  ;;  %v1205_v13 = vmul.f32 -1.442695, %v2079_v5  ;;  %v2092_v14 = vadd.f32 %v2029_v26, %v601_v6 }
 0x157   : > { %1568 = vpow2.f32 %v1200_v63  ;;  %v1187_v15 = vmul.f32 -1.442695, %v2083_v9  ;;  %v1203_v16 = vmul.f32 -1.442695, %v2086_v10  ;;  %v2098_v21 = vadd.f32 %v2029_v26, %v617_v11 }
 0x158   : > { %1570 = vpow2.f32 %v1189_v12  ;;  %v1190_v17 = vmul.f32 -1.442695, %v2092_v14  ;;  %v599_v28 = vmul.f32 %v2024_v24, %v479_v7  ;;  %v615_v29 = vmul.f32 %v2024_v24, %v543_v8 }
 0x159   : > { %1572 = vpow2.f32 %v1205_v13  ;;  %v1431_v18 = vpop.f32.mrb[8].mxu0  ;;  %v1447_v19 = vpop.f32.mrb[8].mxu1  ;;  %v2103_v44 = vmul.f32 -1.442695, %v2098_v21 }
 0x15a   : > { %v1555_v20 = vpop.eup %1554  ;;  %1574 = vpow2.f32 %v1187_v15  ;;  %v492_v22 = vpop.f32.mrb[9].mxu0  ;;  %v2106_v47 = vadd.f32 %v2029_v26, %v599_v28  ;;  %v2109_v50 = vadd.f32 %v2029_v26, %v615_v29  ;;  %v604_v55 = vmul.f32 %v1431_v18, %v2024_v24 }
 0x15b   : > { %v556_v23 = vpop.f32.mrb[9].mxu1  ;;  %v1557_v25 = vpop.eup %1556  ;;  %v763_v27 = vadd.f32 1.0, %v1555_v20  ;;  %1576 = vpow2.f32 %v1203_v16  ;;  %v620_v56 = vmul.f32 %v1447_v19, %v2024_v24  ;;  %v602_v59 = vmul.f32 %v2024_v24, %v492_v22 }
 0x15c   : > { %v1432_v30 = vpop.f32.mrb[10].mxu0  ;;  %v1448_v31 = vpop.f32.mrb[10].mxu1  ;;  %v779_v33 = vadd.f32 1.0, %v1557_v25  ;;  %1578 = vpow2.f32 %v1190_v17  ;;  %v618_v60 = vmul.f32 %v2024_v24, %v556_v23  ;;  %v1188_v11 = vmul.f32 -1.442695, %v2106_v47 }
 0x15d   : > { %v1559_v32 = vpop.eup %1558  ;;  %v495_v34 = vpop.f32.mrb[11].mxu0  ;;  %1580 = vrcp.f32 %v763_v27  ;;  %v605_v1 = vmul.f32 %v1432_v30, %v2024_v24  ;;  %v621_v2 = vmul.f32 %v1448_v31, %v2024_v24  ;;  %v2128_v18 = vadd.f32 %v2029_v26, %v604_v55 }
 0x15e   : > { %v1561_v35 = vpop.eup %1560  ;;  %v761_v38 = vadd.f32 1.0, %v1559_v32  ;;  %v559_v39 = vpop.f32.mrb[11].mxu1  ;;  %1582 = vrcp.f32 %v779_v33  ;;  %v603_v12 = vmul.f32 %v2024_v24, %v495_v34  ;;  %v2131_v19 = vadd.f32 %v2029_v26, %v620_v56 }
 0x15f   : > { %v1563_v40 = vpop.eup %1562  ;;  %v777_v41 = vadd.f32 1.0, %v1561_v35  ;;  %v2138_v27 = vadd.f32 %v2029_v26, %v602_v59  ;;  %v2141_v28 = vadd.f32 %v2029_v26, %v618_v60  ;;  %v2144_v31 = vadd.f32 %v2029_v26, %v605_v1 }
 0x160   : > { %v1565_v45 = vpop.eup %1564  ;;  %1584 = vrcp.f32 %v761_v38  ;;  %v764_v46 = vadd.f32 1.0, %v1563_v40  ;;  %v2147_v32 = vadd.f32 %v2029_v26, %v621_v2  ;;  %v2150_v35 = vadd.f32 %v2029_v26, %v603_v12 }
 0x161   : > { %v1567_v51 = vpop.eup %1566  ;;  %1586 = vrcp.f32 %v777_v41  ;;  %v780_v54 = vadd.f32 1.0, %v1565_v45  ;;  %v1435_v61 = vpop.f32.mrb[12].mxu0  ;;  %v619_v38 = vmul.f32 %v2024_v24, %v559_v39  ;;  %v1204_v41 = vmul.f32 -1.442695, %v2109_v50 }
 0x162   : > { %v1569_v57 = vpop.eup %1568  ;;  %1588 = vrcp.f32 %v764_v46  ;;  %v762_v58 = vadd.f32 1.0, %v1567_v51  ;;  %v1451_v62 = vpop.f32.mrb[12].mxu1  ;;  %v1193_v45 = vmul.f32 -1.442695, %v2128_v18  ;;  %v1209_v51 = vmul.f32 -1.442695, %v2131_v19 }
 0x163   : > { %v1571_v63 = vpop.eup %1570  ;;  %1590 = vrcp.f32 %v780_v54  ;;  %v778_v0 = vadd.f32 1.0, %v1569_v57  ;;  %v2117_v3 = vpop.f32.mrb[13].mxu0  ;;  %v608_v54 = vmul.f32 %v1435_v61, %v2024_v24  ;;  %v624_v55 = vmul.f32 %v1451_v62, %v2024_v24 }
 0x164   : > { %v2119_v6 = vpop.f32.mrb[13].mxu1  ;;  %v1573_v7 = vpop.eup %1572  ;;  %1592 = vrcp.f32 %v762_v58  ;;  %v767_v8 = vadd.f32 1.0, %v1571_v63  ;;  %v1191_v57 = vmul.f32 -1.442695, %v2138_v27  ;;  %v1207_v39 = vmul.f32 -1.442695, %v2141_v28 }
 0x165   : > { %v2123_v13 = vpop.f32.mrb[14].mxu0  ;;  %v2125_v15 = vpop.f32.mrb[14].mxu1  ;;  %1594 = vrcp.f32 %v778_v0  ;;  %v783_v17 = vadd.f32 1.0, %v1573_v7  ;;  %v1194_v58 = vmul.f32 -1.442695, %v2144_v31  ;;  %v2165_v0 = vadd.f32 %v2029_v26, %v619_v38 }
 0x166   : > { %v1575_v16 = vpop.eup %1574  ;;  %v2133_v20 = vpop.f32.mrb[15].mxu0  ;;  %1596 = vrcp.f32 %v767_v8  ;;  %v1210_v60 = vmul.f32 -1.442695, %v2147_v32  ;;  %v1192_v63 = vmul.f32 -1.442695, %v2150_v35  ;;  %v2172_v8 = vadd.f32 %v2029_v26, %v608_v54 }
 0x167   : > { %v2135_v22 = vpop.f32.mrb[15].mxu1  ;;  %v1577_v23 = vpop.eup %1576  ;;  %v765_v25 = vadd.f32 1.0, %v1575_v16  ;;  %1598 = vrcp.f32 %v783_v17 }
 0x168   : > { %v1579_v29 = vpop.eup %1578  ;;  %v781_v30 = vadd.f32 1.0, %v1577_v23 }
 0x169   : > { %v1581_v33 = vpop.eup %1580  ;;  %1600 = vrcp.f32 %v765_v25  ;;  %v768_v34 = vadd.f32 1.0, %v1579_v29 }
 0x16a   : > { %v1583_v40 = vpop.eup %1582  ;;  %1602 = vrcp.f32 %v781_v30  ;;  %v859_v62 = vmul.f32 %v1581_v33, %v2036_v36 }
 0x16b   : > { %v1585_v46 = vpop.eup %1584  ;;  %1604 = vrcp.f32 %v768_v34 }
 0x16c   : > { %v1587_v56 = vpop.eup %1586  ;;  %1606 = vpow2.f32 %v2103_v44  ;;  %v875_v44 = vmul.f32 %v1583_v40, %v2039_v37  ;;  %v857_v16 = vmul.f32 %v1585_v46, %v2044_v42 }
 0x16d   : > { %v1589_v59 = vpop.eup %1588  ;;  %1608 = vpow2.f32 %v1188_v11  ;;  %v2175_v11 = vadd.f32 %v2029_v26, %v624_v55  ;;  %v873_v17 = vmul.f32 %v1587_v56, %v2047_v43 }
 0x16e   : > { %v1591_v61 = vpop.eup %1590  ;;  %v860_v1 = vmul.f32 %v1589_v59, %v2054_v48  ;;  %1610 = vpow2.f32 %v1204_v41 }
 0x16f   : > { %v1593_v2 = vpop.eup %1592  ;;  %v876_v7 = vmul.f32 %v1591_v61, %v2057_v49  ;;  %1612 = vpow2.f32 %v1193_v45  ;;  %v1213_v33 = vmul.f32 -1.442695, %v2175_v11 }
 0x170   : > { %v1595_v12 = vpop.eup %1594  ;;  %v1294_v36 = vpack.c.bf16 %v860_v1, %v859_v62  ;;  %v858_v37 = vmul.f32 %v1593_v2, %v2062_v52  ;;  %1614 = vpow2.f32 %v1209_v51  ;;  %v1208_v52 = vmul.f32 -1.442695, %v2165_v0 }
 0x171   : > { %v1597_v48 = vpop.eup %1596  ;;  %v1334_v23 = vpack.c.bf16 %v876_v7, %v875_v44  ;;  %v874_v49 = vmul.f32 %v1595_v12, %v2065_v53  ;;  %1616 = vpow2.f32 %v1191_v57  ;;  %v1197_v53 = vmul.f32 -1.442695, %v2172_v8 }
 0x172   : > { %v2181_v25 = vpop.eup %1598  ;;  %1366 = vst [vmem:[%s2185_s9 + $0x8] sm:$0xff] %v1294_v36   ;;  %v1289_v42 = vpack.c.bf16 %v858_v37, %v857_v16  ;;  %1618 = vpow2.f32 %v1207_v39  ;;  %v863_v40 = vmul.f32 %v1597_v48, %v2076_v4  ;;  %v606_v4 = vmul.f32 %v2024_v24, %v2117_v3 }
 0x173   : > { %v2189_v29 = vpop.eup %1600  ;;  %1374 = vst [vmem:[%s2185_s9 + $0x48] sm:$0xff] %v1334_v23   ;;  %v1329_v43 = vpack.c.bf16 %v874_v49, %v873_v17  ;;  %1620 = vpow2.f32 %v1194_v58  ;;  %v609_v62 = vmul.f32 %v2123_v13, %v2024_v24  ;;  %v625_v2 = vmul.f32 %v2125_v15, %v2024_v24 }
 0x174   : > { %v2193_v30 = vpop.eup %1602  ;;  %1290 = vst [vmem:[%s2185_s9] sm:$0xff] %v1289_v42   ;;  %1622 = vpow2.f32 %v1210_v60  ;;  %v622_v60 = vmul.f32 %v2024_v24, %v2119_v6  ;;  %v2210_v12 = vadd.f32 %v2029_v26, %v606_v4  ;;  %v607_v6 = vmul.f32 %v2024_v24, %v2133_v20 }
 0x175   : > { %v1605_v34 = vpop.eup %1604  ;;  %1373 = vst [vmem:[%s2185_s9 + $0x40] sm:$0xff] %v1329_v43   ;;  %1624 = vpow2.f32 %v1192_v63  ;;  %v623_v37 = vmul.f32 %v2024_v24, %v2135_v22  ;;  %v2220_v17 = vadd.f32 %v2029_v26, %v609_v62  ;;  %v2223_v20 = vadd.f32 %v2029_v26, %v625_v2 }
 0x176   : > { %v1607_v38 = vpop.eup %1606  ;;  %v864_v41 = vmul.f32 %v1605_v34, %v2092_v14  ;;  %1626 = vpow2.f32 %v1208_v52  ;;  %v2215_v13 = vadd.f32 %v2029_v26, %v622_v60  ;;  %v1195_v52 = vmul.f32 -1.442695, %v2210_v12 }
 0x177   : > { %v1609_v45 = vpop.eup %1608  ;;  %v784_v46 = vadd.f32 1.0, %v1607_v38  ;;  %1628 = vpow2.f32 %v1197_v53  ;;  %v2227_v43 = vadd.f32 %v2029_v26, %v607_v6  ;;  %v2231_v53 = vadd.f32 %v2029_v26, %v623_v37 }
 0x178   : > { %v1611_v51 = vpop.eup %1610  ;;  %v1304_v54 = vpack.c.bf16 %v864_v41, %v863_v40  ;;  %v766_v55 = vadd.f32 1.0, %v1609_v45  ;;  %1630 = vpow2.f32 %v1213_v33  ;;  %v1211_v22 = vmul.f32 -1.442695, %v2215_v13 }
 0x179   : > { %v1613_v56 = vpop.eup %1612  ;;  %1632 = vrcp.f32 %v784_v46  ;;  %v782_v57 = vadd.f32 1.0, %v1611_v51  ;;  %v879_v34 = vmul.f32 %v2181_v25, %v2079_v5  ;;  %v1198_v40 = vmul.f32 -1.442695, %v2220_v17 }
 0x17a   : > { %v1615_v39 = vpop.eup %1614  ;;  %1368 = vst [vmem:[%s2185_s9 + $0x18] sm:$0xff] %v1304_v54   ;;  %1634 = vrcp.f32 %v766_v55  ;;  %v771_v58 = vadd.f32 1.0, %v1613_v56  ;;  %v861_v45 = vmul.f32 %v2189_v29, %v2083_v9  ;;  %v877_v46 = vmul.f32 %v2193_v30, %v2086_v10 }
 0x17b   : > { %v1617_v59 = vpop.eup %1616  ;;  %1636 = vrcp.f32 %v782_v57  ;;  %v787_v14 = vadd.f32 1.0, %v1615_v39  ;;  %v1214_v26 = vmul.f32 -1.442695, %v2223_v20  ;;  %v1212_v9 = vmul.f32 -1.442695, %v2231_v53 }
 0x17c   : > { %v1619_v63 = vpop.eup %1618  ;;  %1638 = vrcp.f32 %v771_v58  ;;  %v769_v61 = vadd.f32 1.0, %v1617_v59 }
 0x17d   : > { %v1621_v44 = vpop.eup %1620  ;;  %1640 = vrcp.f32 %v787_v14  ;;  %v785_v1 = vadd.f32 1.0, %v1619_v63 }
 0x17e   : > { %v1623_v7 = vpop.eup %1622  ;;  %1642 = vrcp.f32 %v769_v61  ;;  %v772_v3 = vadd.f32 1.0, %v1621_v44 }
 0x17f   : > { %v1625_v16 = vpop.eup %1624  ;;  %1644 = vrcp.f32 %v785_v1  ;;  %v788_v36 = vadd.f32 1.0, %v1623_v7 }
 0x180   : > { %v1627_v48 = vpop.eup %1626  ;;  %1646 = vrcp.f32 %v772_v3  ;;  %v770_v15 = vadd.f32 1.0, %v1625_v16 }
 0x181   : > { %v1629_v23 = vpop.eup %1628  ;;  %1648 = vrcp.f32 %v788_v36  ;;  %v786_v49 = vadd.f32 1.0, %v1627_v48 }
 0x182   : > { %v1631_v42 = vpop.eup %1630  ;;  %1650 = vrcp.f32 %v770_v15  ;;  %v775_v62 = vadd.f32 1.0, %v1629_v23 }
 0x183   : > { %v1633_v24 = vpop.eup %1632  ;;  %1652 = vrcp.f32 %v786_v49  ;;  %v791_v1 = vadd.f32 1.0, %v1631_v42 }
 0x184   : > { %v1635_v33 = vpop.eup %1634  ;;  %v880_v38 = vmul.f32 %v1633_v24, %v2098_v21  ;;  %1654 = vpow2.f32 %v1195_v52  ;;  %v1196_v21 = vmul.f32 -1.442695, %v2227_v43 }
 0x185   : > { %v1637_v41 = vpop.eup %1636  ;;  %v862_v51 = vmul.f32 %v1635_v33, %v2106_v47  ;;  %1656 = vpow2.f32 %v1211_v22 }
 0x186   : > { %v1639_v54 = vpop.eup %1638  ;;  %v1344_v55 = vpack.c.bf16 %v880_v38, %v879_v34  ;;  %v878_v5 = vmul.f32 %v1637_v41, %v2109_v50  ;;  %1658 = vpow2.f32 %v1198_v40 }
 0x187   : > { %v1641_v25 = vpop.eup %1640  ;;  %v1299_v56 = vpack.c.bf16 %v862_v51, %v861_v45  ;;  %1660 = vpow2.f32 %v1214_v26  ;;  %v867_v50 = vmul.f32 %v1639_v54, %v2128_v18 }
 0x188   : > { %v1643_v29 = vpop.eup %1642  ;;  %1376 = vst [vmem:[%s2185_s9 + $0x58] sm:$0xff] %v1344_v55   ;;  %v1339_v10 = vpack.c.bf16 %v878_v5, %v877_v46  ;;  %1662 = vpow2.f32 %v1196_v21  ;;  %v883_v4 = vmul.f32 %v1641_v25, %v2131_v19 }
 0x189   : > { %v1645_v47 = vpop.eup %1644  ;;  %1367 = vst [vmem:[%s2185_s9 + $0x10] sm:$0xff] %v1299_v56   ;;  %1664 = vpow2.f32 %v1212_v9  ;;  %v865_v60 = vmul.f32 %v1643_v29, %v2138_v27 }
 0x18a   : > { %v1647_v30 = vpop.eup %1646  ;;  %1375 = vst [vmem:[%s2185_s9 + $0x50] sm:$0xff] %v1339_v10   ;;  %v881_v18 = vmul.f32 %v1645_v47, %v2141_v28  ;;  %1666 = vrcp.f32 %v775_v62 }
 0x18b   : > { %v1649_v57 = vpop.eup %1648  ;;  %v868_v39 = vmul.f32 %v1647_v30, %v2144_v31  ;;  %1668 = vrcp.f32 %v791_v1 }
 0x18c   : > { %v1651_v58 = vpop.eup %1650  ;;  %v884_v59 = vmul.f32 %v1649_v57, %v2147_v32 }
 0x18d   : > { %v1653_v14 = vpop.eup %1652  ;;  %v1314_v63 = vpack.c.bf16 %v868_v39, %v867_v50  ;;  %v866_v61 = vmul.f32 %v1651_v58, %v2150_v35 }
 0x18e   : > { %v1354_v44 = vpack.c.bf16 %v884_v59, %v883_v4  ;;  %v882_v31 = vmul.f32 %v1653_v14, %v2165_v0  ;;  %v1655_v19 = vpop.eup %1654 }
 0x18f   : > { %1370 = vst [vmem:[%s2185_s9 + $0x28] sm:$0xff] %v1314_v63   ;;  %v1309_v2 = vpack.c.bf16 %v866_v61, %v865_v60  ;;  %v1657_v7 = vpop.eup %1656  ;;  %v773_v27 = vadd.f32 1.0, %v1655_v19 }
 0x190   : > { %1378 = vst [vmem:[%s2185_s9 + $0x68] sm:$0xff] %v1354_v44   ;;  %v1349_v32 = vpack.c.bf16 %v882_v31, %v881_v18  ;;  %v1659_v3 = vpop.eup %1658  ;;  %v789_v35 = vadd.f32 1.0, %v1657_v7 }
 0x191   : > { %1369 = vst [vmem:[%s2185_s9 + $0x20] sm:$0xff] %v1309_v2   ;;  %v1661_v6 = vpop.eup %1660  ;;  %1670 = vrcp.f32 %v773_v27  ;;  %v776_v28 = vadd.f32 1.0, %v1659_v3 }
 0x192   : > { %1377 = vst [vmem:[%s2185_s9 + $0x60] sm:$0xff] %v1349_v32   ;;  %v1663_v16 = vpop.eup %1662  ;;  %1672 = vrcp.f32 %v789_v35  ;;  %v792_v0 = vadd.f32 1.0, %v1661_v6 }
 0x193   : > { %v1665_v36 = vpop.eup %1664  ;;  %1674 = vrcp.f32 %v776_v28  ;;  %v774_v37 = vadd.f32 1.0, %v1663_v16 }
 0x194   : > { %1676 = vrcp.f32 %v792_v0  ;;  %v790_v48 = vadd.f32 1.0, %v1665_v36  ;;  %v1667_v15 = vpop.eup %1666 }
 0x195   : > { %1678 = vrcp.f32 %v774_v37  ;;  %v1669_v23 = vpop.eup %1668  ;;  %v871_v22 = vmul.f32 %v1667_v15, %v2172_v8 }
 0x196   : > { %1680 = vrcp.f32 %v790_v48  ;;  %v887_v38 = vmul.f32 %v1669_v23, %v2175_v11 }
 0x19b   : > { %v1671_v49 = vpop.eup %1670 }
 0x19c   : > { %v1673_v42 = vpop.eup %1672  ;;  %v869_v45 = vmul.f32 %v1671_v49, %v2210_v12 }
 0x19d   : > { %v1675_v52 = vpop.eup %1674 }
 0x19e   : > { %v1677_v24 = vpop.eup %1676  ;;  %v872_v33 = vmul.f32 %v1675_v52, %v2220_v17  ;;  %v885_v17 = vmul.f32 %v1673_v42, %v2215_v13 }
 0x19f   : > { %v1679_v34 = vpop.eup %1678  ;;  %v888_v40 = vmul.f32 %v1677_v24, %v2223_v20 }
 0x1a0   : > { %v1681_v41 = vpop.eup %1680  ;;  %v1324_v46 = vpack.c.bf16 %v872_v33, %v871_v22  ;;  %v870_v8 = vmul.f32 %v1679_v34, %v2227_v43 }
 0x1a1   : > { %v1364_v51 = vpack.c.bf16 %v888_v40, %v887_v38  ;;  %v886_v26 = vmul.f32 %v1681_v41, %v2231_v53 }
 0x1a2   : > { %1372 = vst [vmem:[%s2185_s9 + $0x38] sm:$0xff] %v1324_v46   ;;  %v1319_v11 = vpack.c.bf16 %v870_v8, %v869_v45 }
 0x1a3   : > { %1380 = vst [vmem:[%s2185_s9 + $0x78] sm:$0xff] %v1364_v51   ;;  %v1359_v12 = vpack.c.bf16 %v886_v26, %v885_v17 }
 0x1a4   : > { %1371 = vst [vmem:[%s2185_s9 + $0x30] sm:$0xff] %v1319_v11  }
 0x1a5   : > { %1379 = vst [vmem:[%s2185_s9 + $0x70] sm:$0xff] %v1359_v12  }
 0x1a6   : > { %1753 = shalt.err (!%p1750_p7)
}
 0x1a7   : > { %s1754_s5 = scalar_lea.hbm %s2275_s19, 2048  ;;  %s1758_s23 = scalar_lea.hbm %s2328_s4, 4096 }
 0x1a8   : > { %p1755_p9 = scmp.ne.s32.totalorder %s2275_s19, %s1754_s5  ;;  %p1759_p5 = scmp.lt.u32.totalorder %s2275_s19, %s2328_s4 }
 0x1a9   : > { %p1760_p11 = scmp.lt.u32.totalorder %s1758_s23, %s1754_s5  ;;  %p1762_p4 = scmp.lt.u32.totalorder %s1754_s5, %s2275_s19 }
 0x1aa   : > { %p1756_p1 = pnand %p1755_p9, %p1938_p12 }
 0x1ab   : > { %p1761_p2 = por %p1760_p11, %p1759_p5 }
 0x1ac   : > { %p1757_p0 = pneg %p1756_p1 }
 0x1ad   : > { %p1763_p6 = por %p1762_p4, %p1761_p2 }
 0x1af   : > { %p1764_p8 = pnand %p1763_p6, %p1757_p0 }
 0x1b1   : > { %1767 = shalt.err (!%p1764_p8)
}
 0x1b2   : > { %s1817_s9 = smov 64   ;;  %s1818_s28 = smov 4  }
 0x1b3   : > { %1475 = dma.vmem_to_hbm [thread:$0]  (%p1938_p12), %s2277_s10, 2048, %s2275_s19, %s1050_s26, %s1817_s9, %s1817_s9, %s1818_s28  }
 0x1b4 PF: > { %s1078_s6 = sand.u32 1, %s1798_s15   ;;  %p2343_p10 = scmp.ne.s32.totalorder %s2333_s22, 0 }
 0x1b5   : > { %p2344_p13 = scmp.ge.s32.totalorder %s1810_s18, 2  ;;  %s1079_s7 = scalar_lea.sflag [#allocation4], %s1078_s6 }
 0x1b7   : > { %p1486_p3 = pnand %p2344_p13, %p2343_p10 }
 0x1b9   : > { %1793 = dma.done.wait (!%p1486_p3), %s1079_s7, 2048  }
 0x1ba   : > { %1795 = vsyncadd (!%p1486_p3), %s1079_s7, 4294965248  ;;  %p18_p7 = scmp.ge.s32.totalorder %s1900_s27, 4   ;;  %s2345_s15 = smov %s1802_s16 }
 0x1bb   : > { %s2346_s16 = smov %s1806_s17  ;;  %s2347_s17 = smov %s1934_s24 }
 0x1bc   : > { %s2348_s18 = smov %s1900_s27  ;;  %20 = sbr.rel (!%p18_p7) target bundleno = 6 (0x6), region = 85 }
 0x1c3   :  { %1084 = vsyncpa [#allocation3], 1 }
 0x1c4   :  { %1086 = vsyncpa [#allocation3 + $0x1], 1 }
 0x1c5   :  { %1087 = vsyncpa [#allocation6], 1 }
 0x1c6   :  { %1088 = vsyncpa [#allocation4], 1 }
 0x1c7   :  { %1090 = vsyncpa [#allocation4 + $0x1], 1 }

</bundles_post_ra>
